<compile_context>
chip_gen: v5e
topology: v5e:2x2
jax: 0.10.0
libtpu: 0.0.40
codegen_flags: <defaults>
</compile_context>

<pallas_src>
import functools
from typing import List, NamedTuple, Sequence

import jax
import jax.numpy as jnp
from jax.experimental import pallas as pl
from jax.experimental.pallas import tpu as pltpu


def _fused_gather_kernel(num_layers, copies_per_step, k, idx_ref, *refs):
    """One grid step of the fused multi-layer shard gather.

    idx_ref : SMEM int32 [L, num_steps * G]   (scalar prefetch, zero-padded)
    refs    : L HBM table refs [T, R, H], then L HBM output refs [k, R, H],
              then one DMA semaphore array of shape (2, L, G).
    """
    L, G = num_layers, copies_per_step
    tables = refs[:L]
    outs = refs[L:2 * L]
    sems = refs[2 * L]

    step = pl.program_id(0)
    nsteps = pl.num_programs(0)
    base = step * G
    bank = step % 2

    # Hoist all SMEM scalar reads before any DMA wait.
    srcs = [[idx_ref[l, base + g] for g in range(G)] for l in range(L)]

    # Issue this step's L*G copies on bank `bank` (tail copies guarded; only
    # the last grid step can be partial).
    for l in range(L):
        for g in range(G):
            @pl.when(base + g < k)
            def _(l=l, g=g):
                pltpu.make_async_copy(
                    tables[l].at[srcs[l][g]],
                    outs[l].at[base + g],
                    sems.at[bank, l, g],
                ).start()

    # Only now retire the PREVIOUS step's copies -> ~2*L*G DMAs stay in
    # flight across grid steps instead of draining at every step boundary.
    @pl.when(step > 0)
    def _():
        for l in range(L):
            for g in range(G):
                pltpu.make_async_copy(
                    tables[l].at[0], outs[l].at[0],
                    sems.at[1 - bank, l, g],
                ).wait()

    # Final step: drain this step's bank as well so every start is matched.
    @pl.when(step == nsteps - 1)
    def _():
        for l in range(L):
            for g in range(G):
                @pl.when(base + g < k)
                def _(l=l, g=g):
                    pltpu.make_async_copy(
                        tables[l].at[0], outs[l].at[0],
                        sems.at[bank, l, g],
                    ).wait()


@functools.partial(jax.jit, static_argnames=("copies_per_step",))
def prefetch_shard_group(tables: Sequence[jax.Array], indices: jax.Array,
                         copies_per_step: int = 16):
    """Fused prefetch for a group of same-signature layers (ONE launch).

    tables:  list of L arrays [T, R, H] (each layer's global shard table,
             passed as separate raw-HBM refs -> never stacked/copied).
    indices: int32 [L, k] shard indices per layer.
    returns: tuple of L arrays [k, R, H].
    """
    L = len(tables)
    T, R, H = tables[0].shape
    k = int(indices.shape[1])

    if k == 0:
        return tuple(jnp.zeros((0, R, H), t.dtype) for t in tables)

    G = max(1, min(int(copies_per_step), k))
    num_steps = pl.cdiv(k, G)          # static Python int
    padded_k = num_steps * G

    # Clip to each table's valid range (bounds safety for data-dependent
    # indices). Only the tiny SMEM index array is padded; outputs are exact.
    idx = jnp.clip(indices.astype(jnp.int32), 0, T - 1)
    if padded_k != k:
        idx = jnp.pad(idx, ((0, 0), (0, padded_k - k)))

    out_shapes = tuple(jax.ShapeDtypeStruct((k, R, H), t.dtype) for t in tables)

    outs = pl.pallas_call(
        functools.partial(_fused_gather_kernel, L, G, k),
        out_shape=out_shapes,
        grid_spec=pltpu.PrefetchScalarGridSpec(
            num_scalar_prefetch=1,                       # indices -> SMEM
            grid=(num_steps,),
            in_specs=[pl.BlockSpec(memory_space=pl.ANY)] * L,   # raw HBM tables
            out_specs=tuple(pl.BlockSpec(memory_space=pl.ANY)
                            for _ in range(L)),                 # raw HBM outputs
            scratch_shapes=[pltpu.SemaphoreType.DMA((2, L, G))],
        ),
        compiler_params=pltpu.CompilerParams(
            # Consecutive steps share semaphore banks (carried dependency).
            dimension_semantics=("arbitrary",),
        ),
    )(idx, *tables)
    return outs


def prefetch_shards(shards: jax.Array, indices: jax.Array,
                    copies_per_step: int = 16) -> jax.Array:
    """Single-layer prefetch: shards[indices] -> contiguous buffer."""
    (out,) = prefetch_shard_group([shards], indices[None, :],
                                  copies_per_step=copies_per_step)
    return out


class CortexMoELayer(NamedTuple):
    """Minimal stand-in for CortexMoE: a global shard collection plus the
    indices of the most relevant shards to prefetch for this layer."""
    shards: jax.Array            # [num_shards, shard_rows, hidden]
    relevant_indices: jax.Array  # [k] int32

    def prefetch(self, copies_per_step: int = 16) -> jax.Array:
        return prefetch_shards(self.shards, self.relevant_indices,
                               copies_per_step=copies_per_step)


class ShardPrefetcher:
    """JAX/Pallas port of the PyTorch ShardPrefetcher registry.

    Layers with identical (shard shape, dtype, k) signatures share a single
    fused kernel launch (separate HBM refs, no table restack); outputs are
    returned in registration order.
    """

    def __init__(self, copies_per_step: int = 16):
        self.cortex_layers: List[CortexMoELayer] = []
        self.copies_per_step = copies_per_step

    @property
    def num_layers(self) -> int:
        return len(self.cortex_layers)

    def register(self, cortex_layer: CortexMoELayer):
        self.cortex_layers.append(cortex_layer)

    def forward(self) -> List[jax.Array]:
        n = self.num_layers
        prefetches: List[jax.Array] = [None] * n

        buckets = {}
        for i, layer in enumerate(self.cortex_layers):
            sig = (layer.shards.shape, str(layer.shards.dtype),
                   layer.relevant_indices.shape)
            buckets.setdefault(sig, []).append(i)

        for layer_ids in buckets.values():
            tables = [self.cortex_layers[i].shards for i in layer_ids]
            idx = jnp.stack([self.cortex_layers[i].relevant_indices
                             for i in layer_ids])          # tiny, scalars only
            outs = prefetch_shard_group(tables, idx,
                                        copies_per_step=self.copies_per_step)
            for slot, i in enumerate(layer_ids):
                prefetches[i] = outs[slot]
        return prefetches

    __call__ = forward


if __name__ == "__main__":
    key = jax.random.PRNGKey(0)
    keys = jax.random.split(key, 3)

    # Group A: two layers sharing a signature -> one fused launch.
    # k=9, copies_per_step=4 -> 3 grid steps (exercises pipelined banks +
    # the tail guard on the final step).
    num_shards, shard_rows, hidden, k = 16, 8, 128, 9
    prefetcher = ShardPrefetcher(copies_per_step=4)
    for li in range(2):
        wkey, ikey = jax.random.split(keys[li])
        shards = jax.random.normal(
            wkey, (num_shards, shard_rows, hidden), dtype=jnp.float32)
        idx = jax.random.permutation(ikey, num_shards)[:k].astype(jnp.int32)
        prefetcher.register(CortexMoELayer(shards=shards, relevant_indices=idx))

    # Group B: a different-signature layer -> its own (L=1) launch.
    wkey, ikey = jax.random.split(keys[2])
    shards_b = jax.random.normal(
        wkey, (12, shard_rows, hidden), dtype=jnp.float32)
    idx_b = jax.random.permutation(ikey, 12)[:5].astype(jnp.int32)
    prefetcher.register(CortexMoELayer(shards=shards_b, relevant_indices=idx_b))

    # Registry forward in registration order.
    prefetches = [jax.block_until_ready(p) for p in prefetcher()]

    # Correctness vs. plain-JAX gather reference.
    for layer, got in zip(prefetcher.cortex_layers, prefetches):
        ref = jnp.take(layer.shards, layer.relevant_indices, axis=0)
        assert got.shape == ref.shape, (got.shape, ref.shape)
        assert jnp.array_equal(got, ref), "fused prefetch mismatch"

    # Per-layer convenience path (single-step case: G clamps to k).
    single = jax.block_until_ready(
        prefetcher.cortex_layers[0].prefetch(copies_per_step=16))
    ref0 = jnp.take(prefetcher.cortex_layers[0].shards,
                    prefetcher.cortex_layers[0].relevant_indices, axis=0)
    assert jnp.array_equal(single, ref0), "per-layer prefetch mismatch"

    print("KERNEL_OK")
</pallas_src>

<mosaic_0001>
module attributes {stable_mosaic.version = 11 : i64} {
  func.func @_fused_gather_kernel(%arg0: i32, %arg1: memref<2x12xi32, #tpu.memory_space<smem>>, %arg2: memref<16x8x128xf32, #tpu.memory_space<any>>, %arg3: memref<16x8x128xf32, #tpu.memory_space<any>>, %arg4: memref<9x8x128xf32, #tpu.memory_space<any>>, %arg5: memref<9x8x128xf32, #tpu.memory_space<any>>, %arg6: memref<2x2x4x!tpu.dma_semaphore, #tpu.memory_space<semaphore_mem>>) attributes {dimension_semantics = [#tpu.dimension_semantics<arbitrary>], iteration_bounds = array<i64: 3>, scalar_prefetch = 1 : i64, scratch_operands = 1 : i64, tpu.core_type = #tpu.core_type<tc>, window_params = [{}, {}, {}, {}]} {
    %c4_i32 = arith.constant 4 : i32
    %0 = arith.muli %arg0, %c4_i32 : i32
    %c2_i32 = arith.constant 2 : i32
    %c0_i32 = arith.constant 0 : i32
    %1 = arith.cmpi eq, %c2_i32, %c0_i32 : i32
    %c1_i32 = arith.constant 1 : i32
    %2 = arith.select %1, %c1_i32, %c2_i32 : i32
    %3 = arith.remsi %arg0, %2 : i32
    %c0_i32_0 = arith.constant 0 : i32
    %4 = arith.cmpi ne, %3, %c0_i32_0 : i32
    %c0_i32_1 = arith.constant 0 : i32
    %5 = arith.cmpi slt, %3, %c0_i32_1 : i32
    %c0_i32_2 = arith.constant 0 : i32
    %6 = arith.cmpi slt, %2, %c0_i32_2 : i32
    %7 = arith.xori %5, %6 : i1
    %8 = arith.andi %7, %4 : i1
    %9 = arith.addi %3, %2 : i32
    %10 = arith.select %8, %9, %3 : i32
    %c0_i32_3 = arith.constant 0 : i32
    %11 = arith.addi %0, %c0_i32_3 : i32
    %c0 = arith.constant 0 : index
    %12 = arith.index_cast %11 : i32 to index
    %13 = memref.load %arg1[%c0, %12] : memref<2x12xi32, #tpu.memory_space<smem>>
    %c1_i32_4 = arith.constant 1 : i32
    %14 = arith.addi %0, %c1_i32_4 : i32
    %c0_5 = arith.constant 0 : index
    %15 = arith.index_cast %14 : i32 to index
    %16 = memref.load %arg1[%c0_5, %15] : memref<2x12xi32, #tpu.memory_space<smem>>
    %c2_i32_6 = arith.constant 2 : i32
    %17 = arith.addi %0, %c2_i32_6 : i32
    %c0_7 = arith.constant 0 : index
    %18 = arith.index_cast %17 : i32 to index
    %19 = memref.load %arg1[%c0_7, %18] : memref<2x12xi32, #tpu.memory_space<smem>>
    %c3_i32 = arith.constant 3 : i32
    %20 = arith.addi %0, %c3_i32 : i32
    %c0_8 = arith.constant 0 : index
    %21 = arith.index_cast %20 : i32 to index
    %22 = memref.load %arg1[%c0_8, %21] : memref<2x12xi32, #tpu.memory_space<smem>>
    %c0_i32_9 = arith.constant 0 : i32
    %23 = arith.addi %0, %c0_i32_9 : i32
    %c1 = arith.constant 1 : index
    %24 = arith.index_cast %23 : i32 to index
    %25 = memref.load %arg1[%c1, %24] : memref<2x12xi32, #tpu.memory_space<smem>>
    %c1_i32_10 = arith.constant 1 : i32
    %26 = arith.addi %0, %c1_i32_10 : i32
    %c1_11 = arith.constant 1 : index
    %27 = arith.index_cast %26 : i32 to index
    %28 = memref.load %arg1[%c1_11, %27] : memref<2x12xi32, #tpu.memory_space<smem>>
    %c2_i32_12 = arith.constant 2 : i32
    %29 = arith.addi %0, %c2_i32_12 : i32
    %c1_13 = arith.constant 1 : index
    %30 = arith.index_cast %29 : i32 to index
    %31 = memref.load %arg1[%c1_13, %30] : memref<2x12xi32, #tpu.memory_space<smem>>
    %c3_i32_14 = arith.constant 3 : i32
    %32 = arith.addi %0, %c3_i32_14 : i32
    %c1_15 = arith.constant 1 : index
    %33 = arith.index_cast %32 : i32 to index
    %34 = memref.load %arg1[%c1_15, %33] : memref<2x12xi32, #tpu.memory_space<smem>>
    %c0_i32_16 = arith.constant 0 : i32
    %35 = arith.addi %0, %c0_i32_16 : i32
    %c9_i32 = arith.constant 9 : i32
    %36 = arith.cmpi slt, %35, %c9_i32 : i32
    %37 = arith.extui %36 : i1 to i32
    %c0_i32_17 = arith.constant 0 : i32
    %38 = arith.cmpi ne, %37, %c0_i32_17 : i32
    scf.if %38 {
      %c0_i32_43 = arith.constant 0 : i32
      %73 = arith.addi %0, %c0_i32_43 : i32
      %c0_i32_44 = arith.constant 0 : i32
      %c0_i32_45 = arith.constant 0 : i32
      %c0_i32_46 = arith.constant 0 : i32
      %c0_i32_47 = arith.constant 0 : i32
      %74 = tpu.memref_slice %arg2[%13, %c0_i32_46, %c0_i32_47] : memref<16x8x128xf32, #tpu.memory_space<any>> -> memref<1x8x128xf32, #tpu.memory_space<any>>
      %75 = tpu.memref_squeeze %74 : memref<1x8x128xf32, #tpu.memory_space<any>> -> memref<8x128xf32, #tpu.memory_space<any>>
      %c0_i32_48 = arith.constant 0 : i32
      %c0_i32_49 = arith.constant 0 : i32
      %76 = tpu.memref_slice %arg4[%73, %c0_i32_48, %c0_i32_49] : memref<9x8x128xf32, #tpu.memory_space<any>> -> memref<1x8x128xf32, #tpu.memory_space<any>>
      %77 = tpu.memref_squeeze %76 : memref<1x8x128xf32, #tpu.memory_space<any>> -> memref<8x128xf32, #tpu.memory_space<any>>
      %78 = tpu.memref_slice %arg6[%10, %c0_i32_44, %c0_i32_45] : memref<2x2x4x!tpu.dma_semaphore, #tpu.memory_space<semaphore_mem>> -> memref<1x1x1x!tpu.dma_semaphore, #tpu.memory_space<semaphore_mem>>
      %79 = tpu.memref_squeeze %78 : memref<1x1x1x!tpu.dma_semaphore, #tpu.memory_space<semaphore_mem>> -> memref<!tpu.dma_semaphore, #tpu.memory_space<semaphore_mem>>
      tpu.enqueue_dma source(%75 : memref<8x128xf32, #tpu.memory_space<any>>) target(%77 : memref<8x128xf32, #tpu.memory_space<any>>) target_semaphore(%79 : memref<!tpu.dma_semaphore, #tpu.memory_space<semaphore_mem>>)
    } else {
    }
    %c1_i32_18 = arith.constant 1 : i32
    %39 = arith.addi %0, %c1_i32_18 : i32
    %c9_i32_19 = arith.constant 9 : i32
    %40 = arith.cmpi slt, %39, %c9_i32_19 : i32
    %41 = arith.extui %40 : i1 to i32
    %c0_i32_20 = arith.constant 0 : i32
    %42 = arith.cmpi ne, %41, %c0_i32_20 : i32
    scf.if %42 {
      %c1_i32_43 = arith.constant 1 : i32
      %73 = arith.addi %0, %c1_i32_43 : i32
      %c0_i32_44 = arith.constant 0 : i32
      %c1_i32_45 = arith.constant 1 : i32
      %c0_i32_46 = arith.constant 0 : i32
      %c0_i32_47 = arith.constant 0 : i32
      %74 = tpu.memref_slice %arg2[%16, %c0_i32_46, %c0_i32_47] : memref<16x8x128xf32, #tpu.memory_space<any>> -> memref<1x8x128xf32, #tpu.memory_space<any>>
      %75 = tpu.memref_squeeze %74 : memref<1x8x128xf32, #tpu.memory_space<any>> -> memref<8x128xf32, #tpu.memory_space<any>>
      %c0_i32_48 = arith.constant 0 : i32
      %c0_i32_49 = arith.constant 0 : i32
      %76 = tpu.memref_slice %arg4[%73, %c0_i32_48, %c0_i32_49] : memref<9x8x128xf32, #tpu.memory_space<any>> -> memref<1x8x128xf32, #tpu.memory_space<any>>
      %77 = tpu.memref_squeeze %76 : memref<1x8x128xf32, #tpu.memory_space<any>> -> memref<8x128xf32, #tpu.memory_space<any>>
      %78 = tpu.memref_slice %arg6[%10, %c0_i32_44, %c1_i32_45] : memref<2x2x4x!tpu.dma_semaphore, #tpu.memory_space<semaphore_mem>> -> memref<1x1x1x!tpu.dma_semaphore, #tpu.memory_space<semaphore_mem>>
      %79 = tpu.memref_squeeze %78 : memref<1x1x1x!tpu.dma_semaphore, #tpu.memory_space<semaphore_mem>> -> memref<!tpu.dma_semaphore, #tpu.memory_space<semaphore_mem>>
      tpu.enqueue_dma source(%75 : memref<8x128xf32, #tpu.memory_space<any>>) target(%77 : memref<8x128xf32, #tpu.memory_space<any>>) target_semaphore(%79 : memref<!tpu.dma_semaphore, #tpu.memory_space<semaphore_mem>>)
    } else {
    }
    %c2_i32_21 = arith.constant 2 : i32
    %43 = arith.addi %0, %c2_i32_21 : i32
    %c9_i32_22 = arith.constant 9 : i32
    %44 = arith.cmpi slt, %43, %c9_i32_22 : i32
    %45 = arith.extui %44 : i1 to i32
    %c0_i32_23 = arith.constant 0 : i32
    %46 = arith.cmpi ne, %45, %c0_i32_23 : i32
    scf.if %46 {
      %c2_i32_43 = arith.constant 2 : i32
      %73 = arith.addi %0, %c2_i32_43 : i32
      %c0_i32_44 = arith.constant 0 : i32
      %c2_i32_45 = arith.constant 2 : i32
      %c0_i32_46 = arith.constant 0 : i32
      %c0_i32_47 = arith.constant 0 : i32
      %74 = tpu.memref_slice %arg2[%19, %c0_i32_46, %c0_i32_47] : memref<16x8x128xf32, #tpu.memory_space<any>> -> memref<1x8x128xf32, #tpu.memory_space<any>>
      %75 = tpu.memref_squeeze %74 : memref<1x8x128xf32, #tpu.memory_space<any>> -> memref<8x128xf32, #tpu.memory_space<any>>
      %c0_i32_48 = arith.constant 0 : i32
      %c0_i32_49 = arith.constant 0 : i32
      %76 = tpu.memref_slice %arg4[%73, %c0_i32_48, %c0_i32_49] : memref<9x8x128xf32, #tpu.memory_space<any>> -> memref<1x8x128xf32, #tpu.memory_space<any>>
      %77 = tpu.memref_squeeze %76 : memref<1x8x128xf32, #tpu.memory_space<any>> -> memref<8x128xf32, #tpu.memory_space<any>>
      %78 = tpu.memref_slice %arg6[%10, %c0_i32_44, %c2_i32_45] : memref<2x2x4x!tpu.dma_semaphore, #tpu.memory_space<semaphore_mem>> -> memref<1x1x1x!tpu.dma_semaphore, #tpu.memory_space<semaphore_mem>>
      %79 = tpu.memref_squeeze %78 : memref<1x1x1x!tpu.dma_semaphore, #tpu.memory_space<semaphore_mem>> -> memref<!tpu.dma_semaphore, #tpu.memory_space<semaphore_mem>>
      tpu.enqueue_dma source(%75 : memref<8x128xf32, #tpu.memory_space<any>>) target(%77 : memref<8x128xf32, #tpu.memory_space<any>>) target_semaphore(%79 : memref<!tpu.dma_semaphore, #tpu.memory_space<semaphore_mem>>)
    } else {
    }
    %c3_i32_24 = arith.constant 3 : i32
    %47 = arith.addi %0, %c3_i32_24 : i32
    %c9_i32_25 = arith.constant 9 : i32
    %48 = arith.cmpi slt, %47, %c9_i32_25 : i32
    %49 = arith.extui %48 : i1 to i32
    %c0_i32_26 = arith.constant 0 : i32
    %50 = arith.cmpi ne, %49, %c0_i32_26 : i32
    scf.if %50 {
      %c3_i32_43 = arith.constant 3 : i32
      %73 = arith.addi %0, %c3_i32_43 : i32
      %c0_i32_44 = arith.constant 0 : i32
      %c3_i32_45 = arith.constant 3 : i32
      %c0_i32_46 = arith.constant 0 : i32
      %c0_i32_47 = arith.constant 0 : i32
      %74 = tpu.memref_slice %arg2[%22, %c0_i32_46, %c0_i32_47] : memref<16x8x128xf32, #tpu.memory_space<any>> -> memref<1x8x128xf32, #tpu.memory_space<any>>
      %75 = tpu.memref_squeeze %74 : memref<1x8x128xf32, #tpu.memory_space<any>> -> memref<8x128xf32, #tpu.memory_space<any>>
      %c0_i32_48 = arith.constant 0 : i32
      %c0_i32_49 = arith.constant 0 : i32
      %76 = tpu.memref_slice %arg4[%73, %c0_i32_48, %c0_i32_49] : memref<9x8x128xf32, #tpu.memory_space<any>> -> memref<1x8x128xf32, #tpu.memory_space<any>>
      %77 = tpu.memref_squeeze %76 : memref<1x8x128xf32, #tpu.memory_space<any>> -> memref<8x128xf32, #tpu.memory_space<any>>
      %78 = tpu.memref_slice %arg6[%10, %c0_i32_44, %c3_i32_45] : memref<2x2x4x!tpu.dma_semaphore, #tpu.memory_space<semaphore_mem>> -> memref<1x1x1x!tpu.dma_semaphore, #tpu.memory_space<semaphore_mem>>
      %79 = tpu.memref_squeeze %78 : memref<1x1x1x!tpu.dma_semaphore, #tpu.memory_space<semaphore_mem>> -> memref<!tpu.dma_semaphore, #tpu.memory_space<semaphore_mem>>
      tpu.enqueue_dma source(%75 : memref<8x128xf32, #tpu.memory_space<any>>) target(%77 : memref<8x128xf32, #tpu.memory_space<any>>) target_semaphore(%79 : memref<!tpu.dma_semaphore, #tpu.memory_space<semaphore_mem>>)
    } else {
    }
    %c0_i32_27 = arith.constant 0 : i32
    %51 = arith.addi %0, %c0_i32_27 : i32
    %c9_i32_28 = arith.constant 9 : i32
    %52 = arith.cmpi slt, %51, %c9_i32_28 : i32
    %53 = arith.extui %52 : i1 to i32
    %c0_i32_29 = arith.constant 0 : i32
    %54 = arith.cmpi ne, %53, %c0_i32_29 : i32
    scf.if %54 {
      %c0_i32_43 = arith.constant 0 : i32
      %73 = arith.addi %0, %c0_i32_43 : i32
      %c1_i32_44 = arith.constant 1 : i32
      %c0_i32_45 = arith.constant 0 : i32
      %c0_i32_46 = arith.constant 0 : i32
      %c0_i32_47 = arith.constant 0 : i32
      %74 = tpu.memref_slice %arg3[%25, %c0_i32_46, %c0_i32_47] : memref<16x8x128xf32, #tpu.memory_space<any>> -> memref<1x8x128xf32, #tpu.memory_space<any>>
      %75 = tpu.memref_squeeze %74 : memref<1x8x128xf32, #tpu.memory_space<any>> -> memref<8x128xf32, #tpu.memory_space<any>>
      %c0_i32_48 = arith.constant 0 : i32
      %c0_i32_49 = arith.constant 0 : i32
      %76 = tpu.memref_slice %arg5[%73, %c0_i32_48, %c0_i32_49] : memref<9x8x128xf32, #tpu.memory_space<any>> -> memref<1x8x128xf32, #tpu.memory_space<any>>
      %77 = tpu.memref_squeeze %76 : memref<1x8x128xf32, #tpu.memory_space<any>> -> memref<8x128xf32, #tpu.memory_space<any>>
      %78 = tpu.memref_slice %arg6[%10, %c1_i32_44, %c0_i32_45] : memref<2x2x4x!tpu.dma_semaphore, #tpu.memory_space<semaphore_mem>> -> memref<1x1x1x!tpu.dma_semaphore, #tpu.memory_space<semaphore_mem>>
      %79 = tpu.memref_squeeze %78 : memref<1x1x1x!tpu.dma_semaphore, #tpu.memory_space<semaphore_mem>> -> memref<!tpu.dma_semaphore, #tpu.memory_space<semaphore_mem>>
      tpu.enqueue_dma source(%75 : memref<8x128xf32, #tpu.memory_space<any>>) target(%77 : memref<8x128xf32, #tpu.memory_space<any>>) target_semaphore(%79 : memref<!tpu.dma_semaphore, #tpu.memory_space<semaphore_mem>>)
    } else {
    }
    %c1_i32_30 = arith.constant 1 : i32
    %55 = arith.addi %0, %c1_i32_30 : i32
    %c9_i32_31 = arith.constant 9 : i32
    %56 = arith.cmpi slt, %55, %c9_i32_31 : i32
    %57 = arith.extui %56 : i1 to i32
    %c0_i32_32 = arith.constant 0 : i32
    %58 = arith.cmpi ne, %57, %c0_i32_32 : i32
    scf.if %58 {
      %c1_i32_43 = arith.constant 1 : i32
      %73 = arith.addi %0, %c1_i32_43 : i32
      %c1_i32_44 = arith.constant 1 : i32
      %c1_i32_45 = arith.constant 1 : i32
      %c0_i32_46 = arith.constant 0 : i32
      %c0_i32_47 = arith.constant 0 : i32
      %74 = tpu.memref_slice %arg3[%28, %c0_i32_46, %c0_i32_47] : memref<16x8x128xf32, #tpu.memory_space<any>> -> memref<1x8x128xf32, #tpu.memory_space<any>>
      %75 = tpu.memref_squeeze %74 : memref<1x8x128xf32, #tpu.memory_space<any>> -> memref<8x128xf32, #tpu.memory_space<any>>
      %c0_i32_48 = arith.constant 0 : i32
      %c0_i32_49 = arith.constant 0 : i32
      %76 = tpu.memref_slice %arg5[%73, %c0_i32_48, %c0_i32_49] : memref<9x8x128xf32, #tpu.memory_space<any>> -> memref<1x8x128xf32, #tpu.memory_space<any>>
      %77 = tpu.memref_squeeze %76 : memref<1x8x128xf32, #tpu.memory_space<any>> -> memref<8x128xf32, #tpu.memory_space<any>>
      %78 = tpu.memref_slice %arg6[%10, %c1_i32_44, %c1_i32_45] : memref<2x2x4x!tpu.dma_semaphore, #tpu.memory_space<semaphore_mem>> -> memref<1x1x1x!tpu.dma_semaphore, #tpu.memory_space<semaphore_mem>>
      %79 = tpu.memref_squeeze %78 : memref<1x1x1x!tpu.dma_semaphore, #tpu.memory_space<semaphore_mem>> -> memref<!tpu.dma_semaphore, #tpu.memory_space<semaphore_mem>>
      tpu.enqueue_dma source(%75 : memref<8x128xf32, #tpu.memory_space<any>>) target(%77 : memref<8x128xf32, #tpu.memory_space<any>>) target_semaphore(%79 : memref<!tpu.dma_semaphore, #tpu.memory_space<semaphore_mem>>)
    } else {
    }
    %c2_i32_33 = arith.constant 2 : i32
    %59 = arith.addi %0, %c2_i32_33 : i32
    %c9_i32_34 = arith.constant 9 : i32
    %60 = arith.cmpi slt, %59, %c9_i32_34 : i32
    %61 = arith.extui %60 : i1 to i32
    %c0_i32_35 = arith.constant 0 : i32
    %62 = arith.cmpi ne, %61, %c0_i32_35 : i32
    scf.if %62 {
      %c2_i32_43 = arith.constant 2 : i32
      %73 = arith.addi %0, %c2_i32_43 : i32
      %c1_i32_44 = arith.constant 1 : i32
      %c2_i32_45 = arith.constant 2 : i32
      %c0_i32_46 = arith.constant 0 : i32
      %c0_i32_47 = arith.constant 0 : i32
      %74 = tpu.memref_slice %arg3[%31, %c0_i32_46, %c0_i32_47] : memref<16x8x128xf32, #tpu.memory_space<any>> -> memref<1x8x128xf32, #tpu.memory_space<any>>
      %75 = tpu.memref_squeeze %74 : memref<1x8x128xf32, #tpu.memory_space<any>> -> memref<8x128xf32, #tpu.memory_space<any>>
      %c0_i32_48 = arith.constant 0 : i32
      %c0_i32_49 = arith.constant 0 : i32
      %76 = tpu.memref_slice %arg5[%73, %c0_i32_48, %c0_i32_49] : memref<9x8x128xf32, #tpu.memory_space<any>> -> memref<1x8x128xf32, #tpu.memory_space<any>>
      %77 = tpu.memref_squeeze %76 : memref<1x8x128xf32, #tpu.memory_space<any>> -> memref<8x128xf32, #tpu.memory_space<any>>
      %78 = tpu.memref_slice %arg6[%10, %c1_i32_44, %c2_i32_45] : memref<2x2x4x!tpu.dma_semaphore, #tpu.memory_space<semaphore_mem>> -> memref<1x1x1x!tpu.dma_semaphore, #tpu.memory_space<semaphore_mem>>
      %79 = tpu.memref_squeeze %78 : memref<1x1x1x!tpu.dma_semaphore, #tpu.memory_space<semaphore_mem>> -> memref<!tpu.dma_semaphore, #tpu.memory_space<semaphore_mem>>
      tpu.enqueue_dma source(%75 : memref<8x128xf32, #tpu.memory_space<any>>) target(%77 : memref<8x128xf32, #tpu.memory_space<any>>) target_semaphore(%79 : memref<!tpu.dma_semaphore, #tpu.memory_space<semaphore_mem>>)
    } else {
    }
    %c3_i32_36 = arith.constant 3 : i32
    %63 = arith.addi %0, %c3_i32_36 : i32
    %c9_i32_37 = arith.constant 9 : i32
    %64 = arith.cmpi slt, %63, %c9_i32_37 : i32
    %65 = arith.extui %64 : i1 to i32
    %c0_i32_38 = arith.constant 0 : i32
    %66 = arith.cmpi ne, %65, %c0_i32_38 : i32
    scf.if %66 {
      %c3_i32_43 = arith.constant 3 : i32
      %73 = arith.addi %0, %c3_i32_43 : i32
      %c1_i32_44 = arith.constant 1 : i32
      %c3_i32_45 = arith.constant 3 : i32
      %c0_i32_46 = arith.constant 0 : i32
      %c0_i32_47 = arith.constant 0 : i32
      %74 = tpu.memref_slice %arg3[%34, %c0_i32_46, %c0_i32_47] : memref<16x8x128xf32, #tpu.memory_space<any>> -> memref<1x8x128xf32, #tpu.memory_space<any>>
      %75 = tpu.memref_squeeze %74 : memref<1x8x128xf32, #tpu.memory_space<any>> -> memref<8x128xf32, #tpu.memory_space<any>>
      %c0_i32_48 = arith.constant 0 : i32
      %c0_i32_49 = arith.constant 0 : i32
      %76 = tpu.memref_slice %arg5[%73, %c0_i32_48, %c0_i32_49] : memref<9x8x128xf32, #tpu.memory_space<any>> -> memref<1x8x128xf32, #tpu.memory_space<any>>
      %77 = tpu.memref_squeeze %76 : memref<1x8x128xf32, #tpu.memory_space<any>> -> memref<8x128xf32, #tpu.memory_space<any>>
      %78 = tpu.memref_slice %arg6[%10, %c1_i32_44, %c3_i32_45] : memref<2x2x4x!tpu.dma_semaphore, #tpu.memory_space<semaphore_mem>> -> memref<1x1x1x!tpu.dma_semaphore, #tpu.memory_space<semaphore_mem>>
      %79 = tpu.memref_squeeze %78 : memref<1x1x1x!tpu.dma_semaphore, #tpu.memory_space<semaphore_mem>> -> memref<!tpu.dma_semaphore, #tpu.memory_space<semaphore_mem>>
      tpu.enqueue_dma source(%75 : memref<8x128xf32, #tpu.memory_space<any>>) target(%77 : memref<8x128xf32, #tpu.memory_space<any>>) target_semaphore(%79 : memref<!tpu.dma_semaphore, #tpu.memory_space<semaphore_mem>>)
    } else {
    }
    %c0_i32_39 = arith.constant 0 : i32
    %67 = arith.cmpi sgt, %arg0, %c0_i32_39 : i32
    %68 = arith.extui %67 : i1 to i32
    %c0_i32_40 = arith.constant 0 : i32
    %69 = arith.cmpi ne, %68, %c0_i32_40 : i32
    scf.if %69 {
      %c1_i32_43 = arith.constant 1 : i32
      %73 = arith.subi %c1_i32_43, %10 : i32
      %c0_i32_44 = arith.constant 0 : i32
      %c0_i32_45 = arith.constant 0 : i32
      %c0_i32_46 = arith.constant 0 : i32
      %c0_i32_47 = arith.constant 0 : i32
      %c0_i32_48 = arith.constant 0 : i32
      %c0_i32_49 = arith.constant 0 : i32
      %74 = tpu.memref_slice %arg2[%c0_i32_44, %c0_i32_48, %c0_i32_49] : memref<16x8x128xf32, #tpu.memory_space<any>> -> memref<1x8x128xf32, #tpu.memory_space<any>>
      %75 = tpu.memref_squeeze %74 : memref<1x8x128xf32, #tpu.memory_space<any>> -> memref<8x128xf32, #tpu.memory_space<any>>
      %c0_i32_50 = arith.constant 0 : i32
      %c0_i32_51 = arith.constant 0 : i32
      %76 = tpu.memref_slice %arg4[%c0_i32_45, %c0_i32_50, %c0_i32_51] : memref<9x8x128xf32, #tpu.memory_space<any>> -> memref<1x8x128xf32, #tpu.memory_space<any>>
      %77 = tpu.memref_squeeze %76 : memref<1x8x128xf32, #tpu.memory_space<any>> -> memref<8x128xf32, #tpu.memory_space<any>>
      %78 = tpu.memref_slice %arg6[%73, %c0_i32_46, %c0_i32_47] : memref<2x2x4x!tpu.dma_semaphore, #tpu.memory_space<semaphore_mem>> -> memref<1x1x1x!tpu.dma_semaphore, #tpu.memory_space<semaphore_mem>>
      %79 = tpu.memref_squeeze %78 : memref<1x1x1x!tpu.dma_semaphore, #tpu.memory_space<semaphore_mem>> -> memref<!tpu.dma_semaphore, #tpu.memory_space<semaphore_mem>>
      tpu.wait_dma2 semaphore(%79 : memref<!tpu.dma_semaphore, #tpu.memory_space<semaphore_mem>>) src(%75 : memref<8x128xf32, #tpu.memory_space<any>>) dst(%77 : memref<8x128xf32, #tpu.memory_space<any>>)
      %c1_i32_52 = arith.constant 1 : i32
      %80 = arith.subi %c1_i32_52, %10 : i32
      %c0_i32_53 = arith.constant 0 : i32
      %c0_i32_54 = arith.constant 0 : i32
      %c0_i32_55 = arith.constant 0 : i32
      %c1_i32_56 = arith.constant 1 : i32
      %c0_i32_57 = arith.constant 0 : i32
      %c0_i32_58 = arith.constant 0 : i32
      %81 = tpu.memref_slice %arg2[%c0_i32_53, %c0_i32_57, %c0_i32_58] : memref<16x8x128xf32, #tpu.memory_space<any>> -> memref<1x8x128xf32, #tpu.memory_space<any>>
      %82 = tpu.memref_squeeze %81 : memref<1x8x128xf32, #tpu.memory_space<any>> -> memref<8x128xf32, #tpu.memory_space<any>>
      %c0_i32_59 = arith.constant 0 : i32
      %c0_i32_60 = arith.constant 0 : i32
      %83 = tpu.memref_slice %arg4[%c0_i32_54, %c0_i32_59, %c0_i32_60] : memref<9x8x128xf32, #tpu.memory_space<any>> -> memref<1x8x128xf32, #tpu.memory_space<any>>
      %84 = tpu.memref_squeeze %83 : memref<1x8x128xf32, #tpu.memory_space<any>> -> memref<8x128xf32, #tpu.memory_space<any>>
      %85 = tpu.memref_slice %arg6[%80, %c0_i32_55, %c1_i32_56] : memref<2x2x4x!tpu.dma_semaphore, #tpu.memory_space<semaphore_mem>> -> memref<1x1x1x!tpu.dma_semaphore, #tpu.memory_space<semaphore_mem>>
      %86 = tpu.memref_squeeze %85 : memref<1x1x1x!tpu.dma_semaphore, #tpu.memory_space<semaphore_mem>> -> memref<!tpu.dma_semaphore, #tpu.memory_space<semaphore_mem>>
      tpu.wait_dma2 semaphore(%86 : memref<!tpu.dma_semaphore, #tpu.memory_space<semaphore_mem>>) src(%82 : memref<8x128xf32, #tpu.memory_space<any>>) dst(%84 : memref<8x128xf32, #tpu.memory_space<any>>)
      %c1_i32_61 = arith.constant 1 : i32
      %87 = arith.subi %c1_i32_61, %10 : i32
      %c0_i32_62 = arith.constant 0 : i32
      %c0_i32_63 = arith.constant 0 : i32
      %c0_i32_64 = arith.constant 0 : i32
      %c2_i32_65 = arith.constant 2 : i32
      %c0_i32_66 = arith.constant 0 : i32
      %c0_i32_67 = arith.constant 0 : i32
      %88 = tpu.memref_slice %arg2[%c0_i32_62, %c0_i32_66, %c0_i32_67] : memref<16x8x128xf32, #tpu.memory_space<any>> -> memref<1x8x128xf32, #tpu.memory_space<any>>
      %89 = tpu.memref_squeeze %88 : memref<1x8x128xf32, #tpu.memory_space<any>> -> memref<8x128xf32, #tpu.memory_space<any>>
      %c0_i32_68 = arith.constant 0 : i32
      %c0_i32_69 = arith.constant 0 : i32
      %90 = tpu.memref_slice %arg4[%c0_i32_63, %c0_i32_68, %c0_i32_69] : memref<9x8x128xf32, #tpu.memory_space<any>> -> memref<1x8x128xf32, #tpu.memory_space<any>>
      %91 = tpu.memref_squeeze %90 : memref<1x8x128xf32, #tpu.memory_space<any>> -> memref<8x128xf32, #tpu.memory_space<any>>
      %92 = tpu.memref_slice %arg6[%87, %c0_i32_64, %c2_i32_65] : memref<2x2x4x!tpu.dma_semaphore, #tpu.memory_space<semaphore_mem>> -> memref<1x1x1x!tpu.dma_semaphore, #tpu.memory_space<semaphore_mem>>
      %93 = tpu.memref_squeeze %92 : memref<1x1x1x!tpu.dma_semaphore, #tpu.memory_space<semaphore_mem>> -> memref<!tpu.dma_semaphore, #tpu.memory_space<semaphore_mem>>
      tpu.wait_dma2 semaphore(%93 : memref<!tpu.dma_semaphore, #tpu.memory_space<semaphore_mem>>) src(%89 : memref<8x128xf32, #tpu.memory_space<any>>) dst(%91 : memref<8x128xf32, #tpu.memory_space<any>>)
      %c1_i32_70 = arith.constant 1 : i32
      %94 = arith.subi %c1_i32_70, %10 : i32
      %c0_i32_71 = arith.constant 0 : i32
      %c0_i32_72 = arith.constant 0 : i32
      %c0_i32_73 = arith.constant 0 : i32
      %c3_i32_74 = arith.constant 3 : i32
      %c0_i32_75 = arith.constant 0 : i32
      %c0_i32_76 = arith.constant 0 : i32
      %95 = tpu.memref_slice %arg2[%c0_i32_71, %c0_i32_75, %c0_i32_76] : memref<16x8x128xf32, #tpu.memory_space<any>> -> memref<1x8x128xf32, #tpu.memory_space<any>>
      %96 = tpu.memref_squeeze %95 : memref<1x8x128xf32, #tpu.memory_space<any>> -> memref<8x128xf32, #tpu.memory_space<any>>
      %c0_i32_77 = arith.constant 0 : i32
      %c0_i32_78 = arith.constant 0 : i32
      %97 = tpu.memref_slice %arg4[%c0_i32_72, %c0_i32_77, %c0_i32_78] : memref<9x8x128xf32, #tpu.memory_space<any>> -> memref<1x8x128xf32, #tpu.memory_space<any>>
      %98 = tpu.memref_squeeze %97 : memref<1x8x128xf32, #tpu.memory_space<any>> -> memref<8x128xf32, #tpu.memory_space<any>>
      %99 = tpu.memref_slice %arg6[%94, %c0_i32_73, %c3_i32_74] : memref<2x2x4x!tpu.dma_semaphore, #tpu.memory_space<semaphore_mem>> -> memref<1x1x1x!tpu.dma_semaphore, #tpu.memory_space<semaphore_mem>>
      %100 = tpu.memref_squeeze %99 : memref<1x1x1x!tpu.dma_semaphore, #tpu.memory_space<semaphore_mem>> -> memref<!tpu.dma_semaphore, #tpu.memory_space<semaphore_mem>>
      tpu.wait_dma2 semaphore(%100 : memref<!tpu.dma_semaphore, #tpu.memory_space<semaphore_mem>>) src(%96 : memref<8x128xf32, #tpu.memory_space<any>>) dst(%98 : memref<8x128xf32, #tpu.memory_space<any>>)
      %c1_i32_79 = arith.constant 1 : i32
      %101 = arith.subi %c1_i32_79, %10 : i32
      %c0_i32_80 = arith.constant 0 : i32
      %c0_i32_81 = arith.constant 0 : i32
      %c1_i32_82 = arith.constant 1 : i32
      %c0_i32_83 = arith.constant 0 : i32
      %c0_i32_84 = arith.constant 0 : i32
      %c0_i32_85 = arith.constant 0 : i32
      %102 = tpu.memref_slice %arg3[%c0_i32_80, %c0_i32_84, %c0_i32_85] : memref<16x8x128xf32, #tpu.memory_space<any>> -> memref<1x8x128xf32, #tpu.memory_space<any>>
      %103 = tpu.memref_squeeze %102 : memref<1x8x128xf32, #tpu.memory_space<any>> -> memref<8x128xf32, #tpu.memory_space<any>>
      %c0_i32_86 = arith.constant 0 : i32
      %c0_i32_87 = arith.constant 0 : i32
      %104 = tpu.memref_slice %arg5[%c0_i32_81, %c0_i32_86, %c0_i32_87] : memref<9x8x128xf32, #tpu.memory_space<any>> -> memref<1x8x128xf32, #tpu.memory_space<any>>
      %105 = tpu.memref_squeeze %104 : memref<1x8x128xf32, #tpu.memory_space<any>> -> memref<8x128xf32, #tpu.memory_space<any>>
      %106 = tpu.memref_slice %arg6[%101, %c1_i32_82, %c0_i32_83] : memref<2x2x4x!tpu.dma_semaphore, #tpu.memory_space<semaphore_mem>> -> memref<1x1x1x!tpu.dma_semaphore, #tpu.memory_space<semaphore_mem>>
      %107 = tpu.memref_squeeze %106 : memref<1x1x1x!tpu.dma_semaphore, #tpu.memory_space<semaphore_mem>> -> memref<!tpu.dma_semaphore, #tpu.memory_space<semaphore_mem>>
      tpu.wait_dma2 semaphore(%107 : memref<!tpu.dma_semaphore, #tpu.memory_space<semaphore_mem>>) src(%103 : memref<8x128xf32, #tpu.memory_space<any>>) dst(%105 : memref<8x128xf32, #tpu.memory_space<any>>)
      %c1_i32_88 = arith.constant 1 : i32
      %108 = arith.subi %c1_i32_88, %10 : i32
      %c0_i32_89 = arith.constant 0 : i32
      %c0_i32_90 = arith.constant 0 : i32
      %c1_i32_91 = arith.constant 1 : i32
      %c1_i32_92 = arith.constant 1 : i32
      %c0_i32_93 = arith.constant 0 : i32
      %c0_i32_94 = arith.constant 0 : i32
      %109 = tpu.memref_slice %arg3[%c0_i32_89, %c0_i32_93, %c0_i32_94] : memref<16x8x128xf32, #tpu.memory_space<any>> -> memref<1x8x128xf32, #tpu.memory_space<any>>
      %110 = tpu.memref_squeeze %109 : memref<1x8x128xf32, #tpu.memory_space<any>> -> memref<8x128xf32, #tpu.memory_space<any>>
      %c0_i32_95 = arith.constant 0 : i32
      %c0_i32_96 = arith.constant 0 : i32
      %111 = tpu.memref_slice %arg5[%c0_i32_90, %c0_i32_95, %c0_i32_96] : memref<9x8x128xf32, #tpu.memory_space<any>> -> memref<1x8x128xf32, #tpu.memory_space<any>>
      %112 = tpu.memref_squeeze %111 : memref<1x8x128xf32, #tpu.memory_space<any>> -> memref<8x128xf32, #tpu.memory_space<any>>
      %113 = tpu.memref_slice %arg6[%108, %c1_i32_91, %c1_i32_92] : memref<2x2x4x!tpu.dma_semaphore, #tpu.memory_space<semaphore_mem>> -> memref<1x1x1x!tpu.dma_semaphore, #tpu.memory_space<semaphore_mem>>
      %114 = tpu.memref_squeeze %113 : memref<1x1x1x!tpu.dma_semaphore, #tpu.memory_space<semaphore_mem>> -> memref<!tpu.dma_semaphore, #tpu.memory_space<semaphore_mem>>
      tpu.wait_dma2 semaphore(%114 : memref<!tpu.dma_semaphore, #tpu.memory_space<semaphore_mem>>) src(%110 : memref<8x128xf32, #tpu.memory_space<any>>) dst(%112 : memref<8x128xf32, #tpu.memory_space<any>>)
      %c1_i32_97 = arith.constant 1 : i32
      %115 = arith.subi %c1_i32_97, %10 : i32
      %c0_i32_98 = arith.constant 0 : i32
      %c0_i32_99 = arith.constant 0 : i32
      %c1_i32_100 = arith.constant 1 : i32
      %c2_i32_101 = arith.constant 2 : i32
      %c0_i32_102 = arith.constant 0 : i32
      %c0_i32_103 = arith.constant 0 : i32
      %116 = tpu.memref_slice %arg3[%c0_i32_98, %c0_i32_102, %c0_i32_103] : memref<16x8x128xf32, #tpu.memory_space<any>> -> memref<1x8x128xf32, #tpu.memory_space<any>>
      %117 = tpu.memref_squeeze %116 : memref<1x8x128xf32, #tpu.memory_space<any>> -> memref<8x128xf32, #tpu.memory_space<any>>
      %c0_i32_104 = arith.constant 0 : i32
      %c0_i32_105 = arith.constant 0 : i32
      %118 = tpu.memref_slice %arg5[%c0_i32_99, %c0_i32_104, %c0_i32_105] : memref<9x8x128xf32, #tpu.memory_space<any>> -> memref<1x8x128xf32, #tpu.memory_space<any>>
      %119 = tpu.memref_squeeze %118 : memref<1x8x128xf32, #tpu.memory_space<any>> -> memref<8x128xf32, #tpu.memory_space<any>>
      %120 = tpu.memref_slice %arg6[%115, %c1_i32_100, %c2_i32_101] : memref<2x2x4x!tpu.dma_semaphore, #tpu.memory_space<semaphore_mem>> -> memref<1x1x1x!tpu.dma_semaphore, #tpu.memory_space<semaphore_mem>>
      %121 = tpu.memref_squeeze %120 : memref<1x1x1x!tpu.dma_semaphore, #tpu.memory_space<semaphore_mem>> -> memref<!tpu.dma_semaphore, #tpu.memory_space<semaphore_mem>>
      tpu.wait_dma2 semaphore(%121 : memref<!tpu.dma_semaphore, #tpu.memory_space<semaphore_mem>>) src(%117 : memref<8x128xf32, #tpu.memory_space<any>>) dst(%119 : memref<8x128xf32, #tpu.memory_space<any>>)
      %c1_i32_106 = arith.constant 1 : i32
      %122 = arith.subi %c1_i32_106, %10 : i32
      %c0_i32_107 = arith.constant 0 : i32
      %c0_i32_108 = arith.constant 0 : i32
      %c1_i32_109 = arith.constant 1 : i32
      %c3_i32_110 = arith.constant 3 : i32
      %c0_i32_111 = arith.constant 0 : i32
      %c0_i32_112 = arith.constant 0 : i32
      %123 = tpu.memref_slice %arg3[%c0_i32_107, %c0_i32_111, %c0_i32_112] : memref<16x8x128xf32, #tpu.memory_space<any>> -> memref<1x8x128xf32, #tpu.memory_space<any>>
      %124 = tpu.memref_squeeze %123 : memref<1x8x128xf32, #tpu.memory_space<any>> -> memref<8x128xf32, #tpu.memory_space<any>>
      %c0_i32_113 = arith.constant 0 : i32
      %c0_i32_114 = arith.constant 0 : i32
      %125 = tpu.memref_slice %arg5[%c0_i32_108, %c0_i32_113, %c0_i32_114] : memref<9x8x128xf32, #tpu.memory_space<any>> -> memref<1x8x128xf32, #tpu.memory_space<any>>
      %126 = tpu.memref_squeeze %125 : memref<1x8x128xf32, #tpu.memory_space<any>> -> memref<8x128xf32, #tpu.memory_space<any>>
      %127 = tpu.memref_slice %arg6[%122, %c1_i32_109, %c3_i32_110] : memref<2x2x4x!tpu.dma_semaphore, #tpu.memory_space<semaphore_mem>> -> memref<1x1x1x!tpu.dma_semaphore, #tpu.memory_space<semaphore_mem>>
      %128 = tpu.memref_squeeze %127 : memref<1x1x1x!tpu.dma_semaphore, #tpu.memory_space<semaphore_mem>> -> memref<!tpu.dma_semaphore, #tpu.memory_space<semaphore_mem>>
      tpu.wait_dma2 semaphore(%128 : memref<!tpu.dma_semaphore, #tpu.memory_space<semaphore_mem>>) src(%124 : memref<8x128xf32, #tpu.memory_space<any>>) dst(%126 : memref<8x128xf32, #tpu.memory_space<any>>)
    } else {
    }
    %c2_i32_41 = arith.constant 2 : i32
    %70 = arith.cmpi eq, %arg0, %c2_i32_41 : i32
    %71 = arith.extui %70 : i1 to i32
    %c0_i32_42 = arith.constant 0 : i32
    %72 = arith.cmpi ne, %71, %c0_i32_42 : i32
    scf.if %72 {
      %c0_i32_43 = arith.constant 0 : i32
      %73 = arith.addi %0, %c0_i32_43 : i32
      %c9_i32_44 = arith.constant 9 : i32
      %74 = arith.cmpi slt, %73, %c9_i32_44 : i32
      %75 = arith.extui %74 : i1 to i32
      %c0_i32_45 = arith.constant 0 : i32
      %76 = arith.cmpi ne, %75, %c0_i32_45 : i32
      scf.if %76 {
        %c0_i32_67 = arith.constant 0 : i32
        %c0_i32_68 = arith.constant 0 : i32
        %c0_i32_69 = arith.constant 0 : i32
        %c0_i32_70 = arith.constant 0 : i32
        %c0_i32_71 = arith.constant 0 : i32
        %c0_i32_72 = arith.constant 0 : i32
        %105 = tpu.memref_slice %arg2[%c0_i32_67, %c0_i32_71, %c0_i32_72] : memref<16x8x128xf32, #tpu.memory_space<any>> -> memref<1x8x128xf32, #tpu.memory_space<any>>
        %106 = tpu.memref_squeeze %105 : memref<1x8x128xf32, #tpu.memory_space<any>> -> memref<8x128xf32, #tpu.memory_space<any>>
        %c0_i32_73 = arith.constant 0 : i32
        %c0_i32_74 = arith.constant 0 : i32
        %107 = tpu.memref_slice %arg4[%c0_i32_68, %c0_i32_73, %c0_i32_74] : memref<9x8x128xf32, #tpu.memory_space<any>> -> memref<1x8x128xf32, #tpu.memory_space<any>>
        %108 = tpu.memref_squeeze %107 : memref<1x8x128xf32, #tpu.memory_space<any>> -> memref<8x128xf32, #tpu.memory_space<any>>
        %109 = tpu.memref_slice %arg6[%10, %c0_i32_69, %c0_i32_70] : memref<2x2x4x!tpu.dma_semaphore, #tpu.memory_space<semaphore_mem>> -> memref<1x1x1x!tpu.dma_semaphore, #tpu.memory_space<semaphore_mem>>
        %110 = tpu.memref_squeeze %109 : memref<1x1x1x!tpu.dma_semaphore, #tpu.memory_space<semaphore_mem>> -> memref<!tpu.dma_semaphore, #tpu.memory_space<semaphore_mem>>
        tpu.wait_dma2 semaphore(%110 : memref<!tpu.dma_semaphore, #tpu.memory_space<semaphore_mem>>) src(%106 : memref<8x128xf32, #tpu.memory_space<any>>) dst(%108 : memref<8x128xf32, #tpu.memory_space<any>>)
      } else {
      }
      %c1_i32_46 = arith.constant 1 : i32
      %77 = arith.addi %0, %c1_i32_46 : i32
      %c9_i32_47 = arith.constant 9 : i32
      %78 = arith.cmpi slt, %77, %c9_i32_47 : i32
      %79 = arith.extui %78 : i1 to i32
      %c0_i32_48 = arith.constant 0 : i32
      %80 = arith.cmpi ne, %79, %c0_i32_48 : i32
      scf.if %80 {
        %c0_i32_67 = arith.constant 0 : i32
        %c0_i32_68 = arith.constant 0 : i32
        %c0_i32_69 = arith.constant 0 : i32
        %c1_i32_70 = arith.constant 1 : i32
        %c0_i32_71 = arith.constant 0 : i32
        %c0_i32_72 = arith.constant 0 : i32
        %105 = tpu.memref_slice %arg2[%c0_i32_67, %c0_i32_71, %c0_i32_72] : memref<16x8x128xf32, #tpu.memory_space<any>> -> memref<1x8x128xf32, #tpu.memory_space<any>>
        %106 = tpu.memref_squeeze %105 : memref<1x8x128xf32, #tpu.memory_space<any>> -> memref<8x128xf32, #tpu.memory_space<any>>
        %c0_i32_73 = arith.constant 0 : i32
        %c0_i32_74 = arith.constant 0 : i32
        %107 = tpu.memref_slice %arg4[%c0_i32_68, %c0_i32_73, %c0_i32_74] : memref<9x8x128xf32, #tpu.memory_space<any>> -> memref<1x8x128xf32, #tpu.memory_space<any>>
        %108 = tpu.memref_squeeze %107 : memref<1x8x128xf32, #tpu.memory_space<any>> -> memref<8x128xf32, #tpu.memory_space<any>>
        %109 = tpu.memref_slice %arg6[%10, %c0_i32_69, %c1_i32_70] : memref<2x2x4x!tpu.dma_semaphore, #tpu.memory_space<semaphore_mem>> -> memref<1x1x1x!tpu.dma_semaphore, #tpu.memory_space<semaphore_mem>>
        %110 = tpu.memref_squeeze %109 : memref<1x1x1x!tpu.dma_semaphore, #tpu.memory_space<semaphore_mem>> -> memref<!tpu.dma_semaphore, #tpu.memory_space<semaphore_mem>>
        tpu.wait_dma2 semaphore(%110 : memref<!tpu.dma_semaphore, #tpu.memory_space<semaphore_mem>>) src(%106 : memref<8x128xf32, #tpu.memory_space<any>>) dst(%108 : memref<8x128xf32, #tpu.memory_space<any>>)
      } else {
      }
      %c2_i32_49 = arith.constant 2 : i32
      %81 = arith.addi %0, %c2_i32_49 : i32
      %c9_i32_50 = arith.constant 9 : i32
      %82 = arith.cmpi slt, %81, %c9_i32_50 : i32
      %83 = arith.extui %82 : i1 to i32
      %c0_i32_51 = arith.constant 0 : i32
      %84 = arith.cmpi ne, %83, %c0_i32_51 : i32
      scf.if %84 {
        %c0_i32_67 = arith.constant 0 : i32
        %c0_i32_68 = arith.constant 0 : i32
        %c0_i32_69 = arith.constant 0 : i32
        %c2_i32_70 = arith.constant 2 : i32
        %c0_i32_71 = arith.constant 0 : i32
        %c0_i32_72 = arith.constant 0 : i32
        %105 = tpu.memref_slice %arg2[%c0_i32_67, %c0_i32_71, %c0_i32_72] : memref<16x8x128xf32, #tpu.memory_space<any>> -> memref<1x8x128xf32, #tpu.memory_space<any>>
        %106 = tpu.memref_squeeze %105 : memref<1x8x128xf32, #tpu.memory_space<any>> -> memref<8x128xf32, #tpu.memory_space<any>>
        %c0_i32_73 = arith.constant 0 : i32
        %c0_i32_74 = arith.constant 0 : i32
        %107 = tpu.memref_slice %arg4[%c0_i32_68, %c0_i32_73, %c0_i32_74] : memref<9x8x128xf32, #tpu.memory_space<any>> -> memref<1x8x128xf32, #tpu.memory_space<any>>
        %108 = tpu.memref_squeeze %107 : memref<1x8x128xf32, #tpu.memory_space<any>> -> memref<8x128xf32, #tpu.memory_space<any>>
        %109 = tpu.memref_slice %arg6[%10, %c0_i32_69, %c2_i32_70] : memref<2x2x4x!tpu.dma_semaphore, #tpu.memory_space<semaphore_mem>> -> memref<1x1x1x!tpu.dma_semaphore, #tpu.memory_space<semaphore_mem>>
        %110 = tpu.memref_squeeze %109 : memref<1x1x1x!tpu.dma_semaphore, #tpu.memory_space<semaphore_mem>> -> memref<!tpu.dma_semaphore, #tpu.memory_space<semaphore_mem>>
        tpu.wait_dma2 semaphore(%110 : memref<!tpu.dma_semaphore, #tpu.memory_space<semaphore_mem>>) src(%106 : memref<8x128xf32, #tpu.memory_space<any>>) dst(%108 : memref<8x128xf32, #tpu.memory_space<any>>)
      } else {
      }
      %c3_i32_52 = arith.constant 3 : i32
      %85 = arith.addi %0, %c3_i32_52 : i32
      %c9_i32_53 = arith.constant 9 : i32
      %86 = arith.cmpi slt, %85, %c9_i32_53 : i32
      %87 = arith.extui %86 : i1 to i32
      %c0_i32_54 = arith.constant 0 : i32
      %88 = arith.cmpi ne, %87, %c0_i32_54 : i32
      scf.if %88 {
        %c0_i32_67 = arith.constant 0 : i32
        %c0_i32_68 = arith.constant 0 : i32
        %c0_i32_69 = arith.constant 0 : i32
        %c3_i32_70 = arith.constant 3 : i32
        %c0_i32_71 = arith.constant 0 : i32
        %c0_i32_72 = arith.constant 0 : i32
        %105 = tpu.memref_slice %arg2[%c0_i32_67, %c0_i32_71, %c0_i32_72] : memref<16x8x128xf32, #tpu.memory_space<any>> -> memref<1x8x128xf32, #tpu.memory_space<any>>
        %106 = tpu.memref_squeeze %105 : memref<1x8x128xf32, #tpu.memory_space<any>> -> memref<8x128xf32, #tpu.memory_space<any>>
        %c0_i32_73 = arith.constant 0 : i32
        %c0_i32_74 = arith.constant 0 : i32
        %107 = tpu.memref_slice %arg4[%c0_i32_68, %c0_i32_73, %c0_i32_74] : memref<9x8x128xf32, #tpu.memory_space<any>> -> memref<1x8x128xf32, #tpu.memory_space<any>>
        %108 = tpu.memref_squeeze %107 : memref<1x8x128xf32, #tpu.memory_space<any>> -> memref<8x128xf32, #tpu.memory_space<any>>
        %109 = tpu.memref_slice %arg6[%10, %c0_i32_69, %c3_i32_70] : memref<2x2x4x!tpu.dma_semaphore, #tpu.memory_space<semaphore_mem>> -> memref<1x1x1x!tpu.dma_semaphore, #tpu.memory_space<semaphore_mem>>
        %110 = tpu.memref_squeeze %109 : memref<1x1x1x!tpu.dma_semaphore, #tpu.memory_space<semaphore_mem>> -> memref<!tpu.dma_semaphore, #tpu.memory_space<semaphore_mem>>
        tpu.wait_dma2 semaphore(%110 : memref<!tpu.dma_semaphore, #tpu.memory_space<semaphore_mem>>) src(%106 : memref<8x128xf32, #tpu.memory_space<any>>) dst(%108 : memref<8x128xf32, #tpu.memory_space<any>>)
      } else {
      }
      %c0_i32_55 = arith.constant 0 : i32
      %89 = arith.addi %0, %c0_i32_55 : i32
      %c9_i32_56 = arith.constant 9 : i32
      %90 = arith.cmpi slt, %89, %c9_i32_56 : i32
      %91 = arith.extui %90 : i1 to i32
      %c0_i32_57 = arith.constant 0 : i32
      %92 = arith.cmpi ne, %91, %c0_i32_57 : i32
      scf.if %92 {
        %c0_i32_67 = arith.constant 0 : i32
        %c0_i32_68 = arith.constant 0 : i32
        %c1_i32_69 = arith.constant 1 : i32
        %c0_i32_70 = arith.constant 0 : i32
        %c0_i32_71 = arith.constant 0 : i32
        %c0_i32_72 = arith.constant 0 : i32
        %105 = tpu.memref_slice %arg3[%c0_i32_67, %c0_i32_71, %c0_i32_72] : memref<16x8x128xf32, #tpu.memory_space<any>> -> memref<1x8x128xf32, #tpu.memory_space<any>>
        %106 = tpu.memref_squeeze %105 : memref<1x8x128xf32, #tpu.memory_space<any>> -> memref<8x128xf32, #tpu.memory_space<any>>
        %c0_i32_73 = arith.constant 0 : i32
        %c0_i32_74 = arith.constant 0 : i32
        %107 = tpu.memref_slice %arg5[%c0_i32_68, %c0_i32_73, %c0_i32_74] : memref<9x8x128xf32, #tpu.memory_space<any>> -> memref<1x8x128xf32, #tpu.memory_space<any>>
        %108 = tpu.memref_squeeze %107 : memref<1x8x128xf32, #tpu.memory_space<any>> -> memref<8x128xf32, #tpu.memory_space<any>>
        %109 = tpu.memref_slice %arg6[%10, %c1_i32_69, %c0_i32_70] : memref<2x2x4x!tpu.dma_semaphore, #tpu.memory_space<semaphore_mem>> -> memref<1x1x1x!tpu.dma_semaphore, #tpu.memory_space<semaphore_mem>>
        %110 = tpu.memref_squeeze %109 : memref<1x1x1x!tpu.dma_semaphore, #tpu.memory_space<semaphore_mem>> -> memref<!tpu.dma_semaphore, #tpu.memory_space<semaphore_mem>>
        tpu.wait_dma2 semaphore(%110 : memref<!tpu.dma_semaphore, #tpu.memory_space<semaphore_mem>>) src(%106 : memref<8x128xf32, #tpu.memory_space<any>>) dst(%108 : memref<8x128xf32, #tpu.memory_space<any>>)
      } else {
      }
      %c1_i32_58 = arith.constant 1 : i32
      %93 = arith.addi %0, %c1_i32_58 : i32
      %c9_i32_59 = arith.constant 9 : i32
      %94 = arith.cmpi slt, %93, %c9_i32_59 : i32
      %95 = arith.extui %94 : i1 to i32
      %c0_i32_60 = arith.constant 0 : i32
      %96 = arith.cmpi ne, %95, %c0_i32_60 : i32
      scf.if %96 {
        %c0_i32_67 = arith.constant 0 : i32
        %c0_i32_68 = arith.constant 0 : i32
        %c1_i32_69 = arith.constant 1 : i32
        %c1_i32_70 = arith.constant 1 : i32
        %c0_i32_71 = arith.constant 0 : i32
        %c0_i32_72 = arith.constant 0 : i32
        %105 = tpu.memref_slice %arg3[%c0_i32_67, %c0_i32_71, %c0_i32_72] : memref<16x8x128xf32, #tpu.memory_space<any>> -> memref<1x8x128xf32, #tpu.memory_space<any>>
        %106 = tpu.memref_squeeze %105 : memref<1x8x128xf32, #tpu.memory_space<any>> -> memref<8x128xf32, #tpu.memory_space<any>>
        %c0_i32_73 = arith.constant 0 : i32
        %c0_i32_74 = arith.constant 0 : i32
        %107 = tpu.memref_slice %arg5[%c0_i32_68, %c0_i32_73, %c0_i32_74] : memref<9x8x128xf32, #tpu.memory_space<any>> -> memref<1x8x128xf32, #tpu.memory_space<any>>
        %108 = tpu.memref_squeeze %107 : memref<1x8x128xf32, #tpu.memory_space<any>> -> memref<8x128xf32, #tpu.memory_space<any>>
        %109 = tpu.memref_slice %arg6[%10, %c1_i32_69, %c1_i32_70] : memref<2x2x4x!tpu.dma_semaphore, #tpu.memory_space<semaphore_mem>> -> memref<1x1x1x!tpu.dma_semaphore, #tpu.memory_space<semaphore_mem>>
        %110 = tpu.memref_squeeze %109 : memref<1x1x1x!tpu.dma_semaphore, #tpu.memory_space<semaphore_mem>> -> memref<!tpu.dma_semaphore, #tpu.memory_space<semaphore_mem>>
        tpu.wait_dma2 semaphore(%110 : memref<!tpu.dma_semaphore, #tpu.memory_space<semaphore_mem>>) src(%106 : memref<8x128xf32, #tpu.memory_space<any>>) dst(%108 : memref<8x128xf32, #tpu.memory_space<any>>)
      } else {
      }
      %c2_i32_61 = arith.constant 2 : i32
      %97 = arith.addi %0, %c2_i32_61 : i32
      %c9_i32_62 = arith.constant 9 : i32
      %98 = arith.cmpi slt, %97, %c9_i32_62 : i32
      %99 = arith.extui %98 : i1 to i32
      %c0_i32_63 = arith.constant 0 : i32
      %100 = arith.cmpi ne, %99, %c0_i32_63 : i32
      scf.if %100 {
        %c0_i32_67 = arith.constant 0 : i32
        %c0_i32_68 = arith.constant 0 : i32
        %c1_i32_69 = arith.constant 1 : i32
        %c2_i32_70 = arith.constant 2 : i32
        %c0_i32_71 = arith.constant 0 : i32
        %c0_i32_72 = arith.constant 0 : i32
        %105 = tpu.memref_slice %arg3[%c0_i32_67, %c0_i32_71, %c0_i32_72] : memref<16x8x128xf32, #tpu.memory_space<any>> -> memref<1x8x128xf32, #tpu.memory_space<any>>
        %106 = tpu.memref_squeeze %105 : memref<1x8x128xf32, #tpu.memory_space<any>> -> memref<8x128xf32, #tpu.memory_space<any>>
        %c0_i32_73 = arith.constant 0 : i32
        %c0_i32_74 = arith.constant 0 : i32
        %107 = tpu.memref_slice %arg5[%c0_i32_68, %c0_i32_73, %c0_i32_74] : memref<9x8x128xf32, #tpu.memory_space<any>> -> memref<1x8x128xf32, #tpu.memory_space<any>>
        %108 = tpu.memref_squeeze %107 : memref<1x8x128xf32, #tpu.memory_space<any>> -> memref<8x128xf32, #tpu.memory_space<any>>
        %109 = tpu.memref_slice %arg6[%10, %c1_i32_69, %c2_i32_70] : memref<2x2x4x!tpu.dma_semaphore, #tpu.memory_space<semaphore_mem>> -> memref<1x1x1x!tpu.dma_semaphore, #tpu.memory_space<semaphore_mem>>
        %110 = tpu.memref_squeeze %109 : memref<1x1x1x!tpu.dma_semaphore, #tpu.memory_space<semaphore_mem>> -> memref<!tpu.dma_semaphore, #tpu.memory_space<semaphore_mem>>
        tpu.wait_dma2 semaphore(%110 : memref<!tpu.dma_semaphore, #tpu.memory_space<semaphore_mem>>) src(%106 : memref<8x128xf32, #tpu.memory_space<any>>) dst(%108 : memref<8x128xf32, #tpu.memory_space<any>>)
      } else {
      }
      %c3_i32_64 = arith.constant 3 : i32
      %101 = arith.addi %0, %c3_i32_64 : i32
      %c9_i32_65 = arith.constant 9 : i32
      %102 = arith.cmpi slt, %101, %c9_i32_65 : i32
      %103 = arith.extui %102 : i1 to i32
      %c0_i32_66 = arith.constant 0 : i32
      %104 = arith.cmpi ne, %103, %c0_i32_66 : i32
      scf.if %104 {
        %c0_i32_67 = arith.constant 0 : i32
        %c0_i32_68 = arith.constant 0 : i32
        %c1_i32_69 = arith.constant 1 : i32
        %c3_i32_70 = arith.constant 3 : i32
        %c0_i32_71 = arith.constant 0 : i32
        %c0_i32_72 = arith.constant 0 : i32
        %105 = tpu.memref_slice %arg3[%c0_i32_67, %c0_i32_71, %c0_i32_72] : memref<16x8x128xf32, #tpu.memory_space<any>> -> memref<1x8x128xf32, #tpu.memory_space<any>>
        %106 = tpu.memref_squeeze %105 : memref<1x8x128xf32, #tpu.memory_space<any>> -> memref<8x128xf32, #tpu.memory_space<any>>
        %c0_i32_73 = arith.constant 0 : i32
        %c0_i32_74 = arith.constant 0 : i32
        %107 = tpu.memref_slice %arg5[%c0_i32_68, %c0_i32_73, %c0_i32_74] : memref<9x8x128xf32, #tpu.memory_space<any>> -> memref<1x8x128xf32, #tpu.memory_space<any>>
        %108 = tpu.memref_squeeze %107 : memref<1x8x128xf32, #tpu.memory_space<any>> -> memref<8x128xf32, #tpu.memory_space<any>>
        %109 = tpu.memref_slice %arg6[%10, %c1_i32_69, %c3_i32_70] : memref<2x2x4x!tpu.dma_semaphore, #tpu.memory_space<semaphore_mem>> -> memref<1x1x1x!tpu.dma_semaphore, #tpu.memory_space<semaphore_mem>>
        %110 = tpu.memref_squeeze %109 : memref<1x1x1x!tpu.dma_semaphore, #tpu.memory_space<semaphore_mem>> -> memref<!tpu.dma_semaphore, #tpu.memory_space<semaphore_mem>>
        tpu.wait_dma2 semaphore(%110 : memref<!tpu.dma_semaphore, #tpu.memory_space<semaphore_mem>>) src(%106 : memref<8x128xf32, #tpu.memory_space<any>>) dst(%108 : memref<8x128xf32, #tpu.memory_space<any>>)
      } else {
      }
    } else {
    }
    return
  }
}

</mosaic_0001>

<bundles_post_ra>
// kernel: prefetch_shard_group.1
= control target key start
LH: loop header
LB: loop body
LE: loop exit
PB: predicated region body
PF: predicated region fallthrough
CT: control target
= control target key end

     0   :  { %s882_s18 = smov [#allocation4]   ;;  %s1200_s0 = inlined_call_operand.vmem [shape: s32[2,12], index: 0, kind: input, shape index: {}]   ;;  %s1201_s1 = inlined_call_operand.hbm [shape: f32[16,8,128], index: 1, kind: input, shape index: {}]   ;;  %s1202_s2 = inlined_call_operand.hbm [shape: f32[16,8,128], index: 2, kind: input, shape index: {}]   ;;  %s1203_s3 = inlined_call_operand.hbm [shape: f32[9,8,128], index: 3, kind: output, shape index: {0}]   ;;  %s1204_s4 = inlined_call_operand.hbm [shape: f32[9,8,128], index: 4, kind: output, shape index: {1}]  }
   0x1   :  { %1208 = sst [smem:[#allocation39_spill]] %s1203_s3  ;;  %s11_s17 = sshll.u32 %s1200_s0, 4  ;;  %s12_s17 = int_to_ptr.vmem [resolvable:$true] %s11_s17 }
   0x2   :  { %14 = dma.vmem_to_smem %s12_s17, 32, %s882_s18, [#allocation3] }
   0x3   :  { %812 = dma.done.wait [#allocation3], 32 }
   0x4   :  { %813 = vsyncadd [#allocation3], 4294967264 }
   0x5   :  { %17 = sfence }
   0x6   :  { %s920_s19 = smov 0  }
   0x7 LB: > { %s926_s20 = sshll.u32 %s880_s19, 2  ;;  %p26_p0 = scmp.lt.s32.totalorder %s880_s19, 0  ;;  %s880_s19 = sphi %s920_s19, %s23_s19  }
   0x8   : > { %s27_s0 = ssub.s32 0, %s880_s19  ;;  %s931_s21 = sld [smem:[#allocation4 + %s926_s20]] }
   0x9   : > { %s591_s22 = smin.u32 %s880_s19, %s27_s0  ;;  %s935_s23 = sadd.s32 1, %s926_s20 }
   0xa   : > { %s29_s24 = sand.u32 1, %s591_s22   ;;  %s938_s25 = sld [smem:[#allocation4 + %s935_s23]] }
   0xb   : > { %s30_s26 = ssub.s32 0, %s29_s24  ;;  %s941_s27 = sadd.s32 2, %s926_s20 }
   0xc   : > { %s1217_s26 = smov (!%p26_p0, %s30_s26), %s29_s24  ;;  %s944_s28 = sld [smem:[#allocation4 + %s941_s27]] }
   0xd   : > { %s947_s29 = sadd.s32 3, %s926_s20  ;;  %p593_p1 = scmp.lt.s32.totalorder %s1217_s26, 0 }
   0xe   : > { %s36_s30 = sadd.s32 2, %s1217_s26  ;;  %s950_s5 = sld [smem:[#allocation4 + %s947_s29]] }
   0xf   : > { %s45_s6 = sshra.s32 %s926_s20, 7  ;;  %s1219_s30 = smov (!%p593_p1, %s36_s30), %s1217_s26 }
  0x10   : > { %s678_s7 = sshll.u32 %s45_s6, 7  ;;  %s50_s8 = sand.u32 127, %s926_s20 }
  0x11   : > { %s679_s9 = sadd.s32 128, %s678_s7  ;;  %s53_s10 = sshra.s32 %s935_s23, 7 }
  0x12   : > { %s51_s11 = sadd.s32 %s679_s9, %s50_s8  ;;  %s680_s12 = sshll.u32 %s53_s10, 7 }
  0x13   : > { %s957_s13 = sld [smem:[#allocation4 + %s51_s11]]  ;;  %s681_s14 = sadd.s32 128, %s680_s12 }
  0x14   : > { %s58_s15 = sand.u32 127, %s935_s23  ;;  %s61_s16 = sshra.s32 %s941_s27, 7 }
  0x15   : > { %s59_s17 = sadd.s32 %s681_s14, %s58_s15  ;;  %s682_s18 = sshll.u32 %s61_s16, 7 }
  0x16   : > { %s961_s0 = sld [smem:[#allocation4 + %s59_s17]]  ;;  %s683_s22 = sadd.s32 128, %s682_s18 }
  0x17   : > { %s66_s24 = sand.u32 127, %s941_s27  ;;  %s69_s26 = sshra.s32 %s947_s29, 7 }
  0x18   : > { %s67_s6 = sadd.s32 %s683_s22, %s66_s24  ;;  %s684_s7 = sshll.u32 %s69_s26, 7 }
  0x19   : > { %s965_s8 = sld [smem:[#allocation4 + %s67_s6]]  ;;  %s685_s9 = sadd.s32 128, %s684_s7 }
  0x1a   : > { %s74_s10 = sand.u32 127, %s947_s29  ;;  %p760_p2 = scmp.lt.s32.totalorder %s926_s20, 9 }
  0x1b   : > { %s75_s11 = sadd.s32 %s685_s9, %s74_s10  ;;  %s599_s14 = sshll.u32 %s931_s21, 3 }
  0x1c   : > { %s969_s12 = sld [smem:[#allocation4 + %s75_s11]]  ;;  %s82_s17 = scalar_lea.hbm %s1201_s1, %s599_s14 }
  0x1d   : > { %s1205_s18 = sshll.u32 %s880_s19, 5  ;;  %s1209_s3 = sld [smem:[#allocation39_spill]] }
  0x1e   : > { %s601_s6 = sshll.u32 %s1219_s30, 3  ;;  %s91_s7 = sshll.u32 %s82_s17, 4  ;;  %s92_s7 = int_to_ptr.hbm [resolvable:$true] %s91_s7 }
  0x1f   : > { %s985_s21 = scalar_lea.sflag [#allocation2], %s601_s6  ;;  %s883_s10 = smov [#allocation5]  }
  0x20   : > { %s884_s11 = smov 0   ;;  %p768_p3 = scmp.gt.s32.totalorder %s880_s19, 0 }
  0x21   : > { %s252_s14 = ssub.s32 1, %s1219_s30  ;;  %p761_p4 = scmp.lt.s32.totalorder %s935_s23, 9 }
  0x22   : > { %s994_s15 = sshll.u32 %s252_s14, 3  ;;  %s603_s16 = sshll.u32 %s938_s25, 3 }
  0x23   : > { %s981_s26 = scalar_lea.hbm %s1209_s3, %s1205_s18  ;;  %s103_s24 = scalar_lea.hbm %s1201_s1, %s603_s16 }
  0x24   : > { %s93_s9 = sshll.u32 %s981_s26, 4  ;;  %s483_s6 = scalar_lea.hbm %s981_s26, 8  ;;  %s94_s9 = int_to_ptr.hbm [resolvable:$true] %s93_s9 }
  0x25   : > { %695 = dma.general (%p760_p2), %s92_s7, 128, %s94_s9, %s985_s21, %s883_s10, [#allocation6], %s884_s11, 0  }
  0x26   : > { %s1002_s18 = scalar_lea.sflag %s985_s21, 1 [#allocation2]  ;;  %s113_s3 = sshll.u32 %s103_s24, 4  ;;  %s114_s3 = int_to_ptr.hbm [resolvable:$true] %s113_s3 }
  0x27   : > { %1210 = sst [smem:[#allocation38_spill]] %s1002_s18  ;;  %s115_s7 = sshll.u32 %s483_s6, 4  ;;  %s116_s7 = int_to_ptr.hbm [resolvable:$true] %s115_s7 }
  0x28   : > { %p762_p5 = scmp.lt.s32.totalorder %s941_s27, 9  ;;  %s885_s30 = smov [#allocation7]  }
  0x29   : > { %697 = dma.general (%p761_p4), %s114_s3, 128, %s116_s7, %s1002_s18, %s885_s30, [#allocation8], %s884_s11, 0  }
  0x2a   : > { %s608_s25 = sshll.u32 %s944_s28, 3  ;;  %s492_s9 = scalar_lea.hbm %s981_s26, 16 }
  0x2b   : > { %s125_s16 = scalar_lea.hbm %s1201_s1, %s608_s25  ;;  %s1015_s17 = scalar_lea.sflag %s985_s21, 2 [#allocation2] }
  0x2c   : > { %s135_s22 = sshll.u32 %s125_s16, 4  ;;  %s137_s24 = sshll.u32 %s492_s9, 4  ;;  %s136_s22 = int_to_ptr.hbm [resolvable:$true] %s135_s22  ;;  %s138_s24 = int_to_ptr.hbm [resolvable:$true] %s137_s24 }
  0x2d   : > { %p763_p6 = scmp.lt.s32.totalorder %s947_s29, 9  ;;  %s886_s6 = smov [#allocation9]  }
  0x2e   : > { %699 = dma.general (%p762_p5), %s136_s22, 128, %s138_s24, %s1015_s17, %s886_s6, [#allocation10], %s884_s11, 0  }
  0x2f   : > { %s613_s3 = sshll.u32 %s950_s5, 3  ;;  %s501_s28 = scalar_lea.hbm %s981_s26, 24 }
  0x30   : > { %s147_s25 = scalar_lea.hbm %s1201_s1, %s613_s3  ;;  %s1028_s10 = scalar_lea.sflag %s985_s21, 3 [#allocation2] }
  0x31   : > { %s157_s9 = sshll.u32 %s147_s25, 4  ;;  %s159_s14 = sshll.u32 %s501_s28, 4  ;;  %s158_s9 = int_to_ptr.hbm [resolvable:$true] %s157_s9  ;;  %s160_s14 = int_to_ptr.hbm [resolvable:$true] %s159_s14 }
  0x32   : > { %s618_s16 = sshll.u32 %s957_s13, 3  ;;  %s887_s18 = smov [#allocation11]  }
  0x33   : > { %701 = dma.general (%p763_p6), %s158_s9, 128, %s160_s14, %s1028_s10, %s887_s18, [#allocation12], %s884_s11, 0  }
  0x34   : > { %s168_s22 = scalar_lea.hbm %s1202_s2, %s618_s16  ;;  %s1211_s24 = sshll.u32 %s880_s19, 5 }
  0x35   : > { %s1043_s7 = scalar_lea.hbm %s1204_s4, %s1211_s24  ;;  %s1046_s28 = scalar_lea.sflag %s985_s21, 4 [#allocation2] }
  0x36   : > { %s178_s13 = sshll.u32 %s168_s22, 4  ;;  %s180_s18 = sshll.u32 %s1043_s7, 4  ;;  %s179_s13 = int_to_ptr.hbm [resolvable:$true] %s178_s13  ;;  %s181_s18 = int_to_ptr.hbm [resolvable:$true] %s180_s18 }
  0x37   : > { %s888_s30 = smov [#allocation13]   ;;  %s622_s25 = sshll.u32 %s961_s0, 3 }
  0x38   : > { %703 = dma.general (%p760_p2), %s179_s13, 128, %s181_s18, %s1046_s28, %s888_s30, [#allocation14], %s884_s11, 0  }
  0x39   : > { %s517_s9 = scalar_lea.hbm %s1043_s7, 8  ;;  %s189_s5 = scalar_lea.hbm %s1202_s2, %s622_s25 }
  0x3a   : > { %s1059_s26 = scalar_lea.sflag %s985_s21, 5 [#allocation2]  ;;  %s199_s22 = sshll.u32 %s189_s5, 4  ;;  %s200_s22 = int_to_ptr.hbm [resolvable:$true] %s199_s22 }
  0x3b   : > { %s201_s24 = sshll.u32 %s517_s9, 4  ;;  %s627_s6 = sshll.u32 %s965_s8, 3  ;;  %s202_s24 = int_to_ptr.hbm [resolvable:$true] %s201_s24 }
  0x3c   : > { %s889_s3 = smov [#allocation15]   ;;  %s210_s18 = scalar_lea.hbm %s1202_s2, %s627_s6 }
  0x3d   : > { %705 = dma.general (%p761_p4), %s200_s22, 128, %s202_s24, %s1059_s26, %s889_s3, [#allocation16], %s884_s11, 0  }
  0x3e   : > { %s526_s30 = scalar_lea.hbm %s1043_s7, 16  ;;  %s1071_s25 = scalar_lea.sflag %s985_s21, 6 [#allocation2] }
  0x3f   : > { %s220_s14 = sshll.u32 %s210_s18, 4  ;;  %s222_s9 = sshll.u32 %s526_s30, 4  ;;  %s221_s14 = int_to_ptr.hbm [resolvable:$true] %s220_s14  ;;  %s223_s9 = int_to_ptr.hbm [resolvable:$true] %s222_s9 }
  0x40   : > { %s890_s8 = smov [#allocation17]   ;;  %s632_s16 = sshll.u32 %s969_s12, 3 }
  0x41   : > { %707 = dma.general (%p762_p5), %s221_s14, 128, %s223_s9, %s1071_s25, %s890_s8, [#allocation18], %s884_s11, 0  }
  0x42   : > { %s535_s5 = scalar_lea.hbm %s1043_s7, 24  ;;  %s231_s6 = scalar_lea.hbm %s1202_s2, %s632_s16 }
  0x43   : > { %s1083_s3 = scalar_lea.sflag %s985_s21, 7 [#allocation2]  ;;  %s241_s0 = sshll.u32 %s231_s6, 4  ;;  %s242_s0 = int_to_ptr.hbm [resolvable:$true] %s241_s0 }
  0x44   : > { %s243_s13 = sshll.u32 %s535_s5, 4  ;;  %s891_s18 = smov [#allocation19]   ;;  %s244_s13 = int_to_ptr.hbm [resolvable:$true] %s243_s13 }
  0x45   : > { %709 = dma.general (%p763_p6), %s242_s0, 128, %s244_s13, %s1083_s3, %s891_s18, [#allocation20], %s884_s11, 0  }
  0x46   : > { %s254_s30 = scalar_lea.sflag [#allocation2], %s994_s15 }
  0x47   : > { %815 = dma.done.wait (%p768_p3), %s254_s30, 128 }
  0x48   : > { %817 = vsyncadd (%p768_p3), %s254_s30, 4294967168  ;;  %s543_s12 = scalar_lea.sflag %s254_s30, 1 [#allocation2] }
  0x49   : > { %819 = dma.done.wait (%p768_p3), %s543_s12, 128 }
  0x4a   : > { %821 = vsyncadd (%p768_p3), %s543_s12, 4294967168  ;;  %s546_s7 = scalar_lea.sflag %s254_s30, 2 [#allocation2] }
  0x4b   : > { %823 = dma.done.wait (%p768_p3), %s546_s7, 128 }
  0x4c   : > { %825 = vsyncadd (%p768_p3), %s546_s7, 4294967168  ;;  %s549_s11 = scalar_lea.sflag %s254_s30, 3 [#allocation2] }
  0x4d   : > { %827 = dma.done.wait (%p768_p3), %s549_s11, 128 }
  0x4e   : > { %829 = vsyncadd (%p768_p3), %s549_s11, 4294967168  ;;  %s552_s15 = scalar_lea.sflag %s254_s30, 4 [#allocation2] }
  0x4f   : > { %831 = dma.done.wait (%p768_p3), %s552_s15, 128 }
  0x50   : > { %833 = vsyncadd (%p768_p3), %s552_s15, 4294967168  ;;  %s555_s14 = scalar_lea.sflag %s254_s30, 5 [#allocation2] }
  0x51   : > { %835 = dma.done.wait (%p768_p3), %s555_s14, 128 }
  0x52   : > { %837 = vsyncadd (%p768_p3), %s555_s14, 4294967168  ;;  %s558_s9 = scalar_lea.sflag %s254_s30, 6 [#allocation2] }
  0x53   : > { %839 = dma.done.wait (%p768_p3), %s558_s9, 128 }
  0x54   : > { %841 = vsyncadd (%p768_p3), %s558_s9, 4294967168  ;;  %s561_s8 = scalar_lea.sflag %s254_s30, 7 [#allocation2] }
  0x55   : > { %843 = dma.done.wait (%p768_p3), %s561_s8, 128 }
  0x56   : > { %845 = vsyncadd (%p768_p3), %s561_s8, 4294967168  ;;  %p769_p7 = scmp.eq.s32.totalorder %s880_s19, 2 }
  0x58   : > { %p1127_p8 = pnand %p769_p7, %p760_p2 }
  0x5a   : > { %p737_p9 = pneg %p1127_p8 }
  0x5c   : > { %847 = dma.done.wait (%p737_p9), %s985_s21, 128 }
  0x5d   : > { %849 = vsyncadd (%p737_p9), %s985_s21, 4294967168  ;;  %s1213_s20 = sld [smem:[#allocation38_spill]]  ;;  %p1145_p10 = pnand %p769_p7, %p761_p4 }
  0x5f   : > { %p740_p11 = pneg %p1145_p10 }
  0x63   : > { %851 = dma.done.wait (%p740_p11), %s1213_s20, 128 }
  0x64   : > { %853 = vsyncadd (%p740_p11), %s1213_s20, 4294967168  ;;  %p1163_p12 = pnand %p769_p7, %p762_p5 }
  0x66   : > { %p743_p13 = pneg %p1163_p12 }
  0x68   : > { %855 = dma.done.wait (%p743_p13), %s1015_s17, 128 }
  0x69   : > { %857 = vsyncadd (%p743_p13), %s1015_s17, 4294967168  ;;  %p745_p0 = pnand %p769_p7, %p763_p6 }
  0x6b   : > { %p746_p1 = pneg %p745_p0 }
  0x6d   : > { %859 = dma.done.wait (%p746_p1), %s1028_s10, 128 }
  0x6e   : > { %861 = vsyncadd (%p746_p1), %s1028_s10, 4294967168 }
  0x6f   : > { %863 = dma.done.wait (%p737_p9), %s1046_s28, 128 }
  0x70   : > { %865 = vsyncadd (%p737_p9), %s1046_s28, 4294967168 }
  0x71   : > { %867 = dma.done.wait (%p740_p11), %s1059_s26, 128 }
  0x72   : > { %869 = vsyncadd (%p740_p11), %s1059_s26, 4294967168 }
  0x73   : > { %871 = dma.done.wait (%p743_p13), %s1071_s25, 128 }
  0x74   : > { %873 = vsyncadd (%p743_p13), %s1071_s25, 4294967168 }
  0x75   : > { %875 = dma.done.wait (%p746_p1), %s1083_s3, 128 }
  0x76   : > { %877 = vsyncadd (%p746_p1), %s1083_s3, 4294967168  ;;  %s23_s19 = sadd.s32 1, %s880_s19  }
  0x77   : > { %p20_p2 = scmp.ge.s32.totalorder %s23_s19, 3  }
  0x79   :  { %22 = sbr.rel (!%p20_p2) target bundleno = 7 (0x7), region = 146 }
  0x7e   :  { %361 = vsyncmov [#allocation2] }
  0x81   :  { %s362_s27 = vpop.sfrf %361 }
  0x82   :  { %p662_p3 = scmp.ne.s32.totalorder %s362_s27, 0 }
  0x84   :  { %366 = shalt.err (%p662_p3)  }
  0x85   :  { %368 = vsyncmov [#allocation2 + $0x1] }
  0x88   :  { %s369_s29 = vpop.sfrf %368 }
  0x89   :  { %p663_p4 = scmp.ne.s32.totalorder %s369_s29, 0 }
  0x8b   :  { %373 = shalt.err (%p663_p4)  }
  0x8c   :  { %375 = vsyncmov [#allocation2 + $0x2] }
  0x8f   :  { %s376_s21 = vpop.sfrf %375 }
  0x90   :  { %p664_p5 = scmp.ne.s32.totalorder %s376_s21, 0 }
  0x92   :  { %380 = shalt.err (%p664_p5)  }
  0x93   :  { %382 = vsyncmov [#allocation2 + $0x3] }
  0x96   :  { %s383_s17 = vpop.sfrf %382 }
  0x97   :  { %p665_p6 = scmp.ne.s32.totalorder %s383_s17, 0 }
  0x99   :  { %387 = shalt.err (%p665_p6)  }
  0x9a   :  { %389 = vsyncmov [#allocation2 + $0x4] }
  0x9d   :  { %s390_s10 = vpop.sfrf %389 }
  0x9e   :  { %p666_p7 = scmp.ne.s32.totalorder %s390_s10, 0 }
  0xa0   :  { %394 = shalt.err (%p666_p7)  }
  0xa1   :  { %396 = vsyncmov [#allocation2 + $0x5] }
  0xa4   :  { %s397_s1 = vpop.sfrf %396 }
  0xa5   :  { %p667_p8 = scmp.ne.s32.totalorder %s397_s1, 0 }
  0xa7   :  { %401 = shalt.err (%p667_p8)  }
  0xa8   :  { %403 = vsyncmov [#allocation2 + $0x6] }
  0xab   :  { %s404_s2 = vpop.sfrf %403 }
  0xac   :  { %p668_p9 = scmp.ne.s32.totalorder %s404_s2, 0 }
  0xae   :  { %408 = shalt.err (%p668_p9)  }
  0xaf   :  { %410 = vsyncmov [#allocation2 + $0x7] }
  0xb2   :  { %s411_s4 = vpop.sfrf %410 }
  0xb3   :  { %p669_p10 = scmp.ne.s32.totalorder %s411_s4, 0 }
  0xb5   :  { %415 = shalt.err (%p669_p10)  }
  0xb6   :  { %417 = vsyncmov [#allocation2 + $0x8] }
  0xb9   :  { %s418_s19 = vpop.sfrf %417 }
  0xba   :  { %p670_p11 = scmp.ne.s32.totalorder %s418_s19, 0 }
  0xbc   :  { %422 = shalt.err (%p670_p11)  }
  0xbd   :  { %424 = vsyncmov [#allocation2 + $0x9] }
  0xc0   :  { %s425_s28 = vpop.sfrf %424 }
  0xc1   :  { %p671_p12 = scmp.ne.s32.totalorder %s425_s28, 0 }
  0xc3   :  { %429 = shalt.err (%p671_p12)  }
  0xc4   :  { %431 = vsyncmov [#allocation2 + $0xa] }
  0xc7   :  { %s432_s26 = vpop.sfrf %431 }
  0xc8   :  { %p672_p13 = scmp.ne.s32.totalorder %s432_s26, 0 }
  0xca   :  { %436 = shalt.err (%p672_p13)  }
  0xcb   :  { %438 = vsyncmov [#allocation2 + $0xb] }
  0xce   :  { %s439_s25 = vpop.sfrf %438 }
  0xcf   :  { %p673_p0 = scmp.ne.s32.totalorder %s439_s25, 0 }
  0xd1   :  { %443 = shalt.err (%p673_p0)  }
  0xd2   :  { %445 = vsyncmov [#allocation2 + $0xc] }
  0xd5   :  { %s446_s22 = vpop.sfrf %445 }
  0xd6   :  { %p674_p1 = scmp.ne.s32.totalorder %s446_s22, 0 }
  0xd8   :  { %450 = shalt.err (%p674_p1)  }
  0xd9   :  { %452 = vsyncmov [#allocation2 + $0xd] }
  0xdc   :  { %s453_s24 = vpop.sfrf %452 }
  0xdd   :  { %p675_p2 = scmp.ne.s32.totalorder %s453_s24, 0 }
  0xdf   :  { %457 = shalt.err (%p675_p2)  }
  0xe0   :  { %459 = vsyncmov [#allocation2 + $0xe] }
  0xe3   :  { %s460_s6 = vpop.sfrf %459 }
  0xe4   :  { %p676_p3 = scmp.ne.s32.totalorder %s460_s6, 0 }
  0xe6   :  { %464 = shalt.err (%p676_p3)  }
  0xe7   :  { %466 = vsyncmov [#allocation2 + $0xf] }
  0xea   :  { %s467_s3 = vpop.sfrf %466 }
  0xeb   :  { %p677_p4 = scmp.ne.s32.totalorder %s467_s3, 0 }
  0xed   :  { %471 = shalt.err (%p677_p4)  }

</bundles_post_ra>
